<compile_context>
chip_gen: v7x
topology: tpu7x:2x2x1
jax: 0.10.0
libtpu: 0.0.40
codegen_flags: <defaults>
</compile_context>

<pallas_src>
import jax
import jax.numpy as jnp
from jax.experimental import pallas as pl
from jax.experimental.pallas import tpu as pltpu


_LANE = 128


def _round_up(v, m):
    return (v + m - 1) // m * m


def _pad2(a, rows, cols, dtype):
    """Cast to dtype and zero-pad a 2-D array up to (rows, cols)."""
    a = a.astype(dtype)
    pr, pc = rows - a.shape[0], cols - a.shape[1]
    if pr or pc:
        a = jnp.pad(a, ((0, pr), (0, pc)))
    return a


# ---------------------------------------------------------------------------
# Fused 2-layer GCN encoder kernel (single grid point, everything in VMEM).
# ---------------------------------------------------------------------------
def _gcn2_fused_kernel(x_ref, adj_ref, w1_ref, b1_ref, w2_ref, b2_ref, o_ref):
    adj = adj_ref[...]                                        # (Np, Np) bf16

    # ---- layer 1: h1 = relu(adj @ (x @ W1) + b1) --------------------------
    s1 = jnp.dot(x_ref[...], w1_ref[...],
                 preferred_element_type=jnp.float32)          # (Np, Hp) f32
    h1 = jnp.dot(adj, s1.astype(adj.dtype),
                 preferred_element_type=jnp.float32)          # (Np, Hp) f32
    h1 = jnp.maximum(h1 + b1_ref[...], 0.0)

    # TODO(synk): training-mode dropout (F.dropout) is not reproduced;
    # inference-mode dropout is an identity, which is what runs here.

    # ---- layer 2: out = adj @ (h1 @ W2) + b2 ------------------------------
    s2 = jnp.dot(h1.astype(adj.dtype), w2_ref[...],
                 preferred_element_type=jnp.float32)          # (Np, Ep) f32
    out = jnp.dot(adj, s2.astype(adj.dtype),
                  preferred_element_type=jnp.float32)         # (Np, Ep) f32
    o_ref[...] = (out + b2_ref[...]).astype(o_ref.dtype)


def gcn_encoder_2(x, adj, params, *, compute_dtype=jnp.bfloat16):
    n, nfeat = x.shape
    w1, b1, w2, b2 = params["w1"], params["b1"], params["w2"], params["b2"]
    nhid, nemb = w1.shape[1], w2.shape[1]
    out_dtype = x.dtype

    # Pad every sublane / lane dimension to a multiple of 128 so all VMEM
    # tiles (including the nemb=64 output) are lane-dense. Zero padding keeps
    # the forward math exact; padded rows/cols are sliced off below.
    n_p = _round_up(n, _LANE)
    nf_p = _round_up(nfeat, _LANE)
    nh_p = _round_up(nhid, _LANE)
    ne_p = _round_up(nemb, _LANE)

    # Rough VMEM working-set estimate (inputs + f32/bf16 intermediates + out).
    cb = jnp.dtype(compute_dtype).itemsize
    ob = jnp.dtype(out_dtype).itemsize
    est_bytes = (
        (n_p * nf_p + n_p * n_p + nf_p * nh_p + nh_p * ne_p) * cb
        + (nh_p + ne_p) * 4
        + n_p * (2 * nh_p + ne_p) * (4 + cb)
        + n_p * ne_p * ob
    )
    if est_bytes > 24 * 1024 * 1024:
        # TODO(synk): large graphs need a tiled / block-sparse multi-call path
        # (adj row tiling + scalar-prefetched block indices); not implemented.
        raise NotImplementedError(
            f"fused VMEM GCN kernel needs ~{est_bytes / 2**20:.1f} MiB "
            "(> 24 MiB budget); use a tiled path for graphs this large")

    xp = _pad2(x, n_p, nf_p, compute_dtype)
    adjp = _pad2(adj, n_p, n_p, compute_dtype)
    w1p = _pad2(w1, nf_p, nh_p, compute_dtype)
    w2p = _pad2(w2, nh_p, ne_p, compute_dtype)
    b1p = _pad2(b1.reshape(1, -1), 1, nh_p, jnp.float32)
    b2p = _pad2(b2.reshape(1, -1), 1, ne_p, jnp.float32)

    vmem_spec = pl.BlockSpec(memory_space=pltpu.MemorySpace.VMEM)
    out_p = pl.pallas_call(
        _gcn2_fused_kernel,
        out_shape=jax.ShapeDtypeStruct((n_p, ne_p), out_dtype),
        in_specs=[vmem_spec] * 6,
        out_specs=vmem_spec,
        compiler_params=pltpu.CompilerParams(
            vmem_limit_bytes=32 * 1024 * 1024,
        ),
    )(xp, adjp, w1p, b1p, w2p, b2p)

    # TODO(synk): a single-grid-point kernel uses one TensorCore; on v7x a
    # 2-block "parallel" M grid would engage the second core (only relevant
    # once n_nodes grows well past this toy size).
    return out_p[:n, :nemb]


# ---------------------------------------------------------------------------
# Deterministic parameter init (mirrors GraphConvolution.reset_parameters:
# uniform(-1/sqrt(out_features), 1/sqrt(out_features))).
# ---------------------------------------------------------------------------
def init_params(key, nfeat, nhid, nemb, dtype=jnp.float32):
    k1, k2, k3, k4 = jax.random.split(key, 4)
    s1 = 1.0 / jnp.sqrt(nhid)
    s2 = 1.0 / jnp.sqrt(nemb)
    return {
        "w1": jax.random.uniform(k1, (nfeat, nhid), dtype, -s1, s1),
        "b1": jax.random.uniform(k2, (nhid,), dtype, -s1, s1),
        "w2": jax.random.uniform(k3, (nhid, nemb), dtype, -s2, s2),
        "b2": jax.random.uniform(k4, (nemb,), dtype, -s2, s2),
    }


def build_normalized_adj(key, n_nodes, dtype=jnp.float32):
    # Random symmetric adjacency with self-loops, D^-1/2 (A+I) D^-1/2.
    a = (jax.random.uniform(key, (n_nodes, n_nodes)) < 0.05).astype(dtype)
    a = jnp.maximum(a, a.T)
    a = a + jnp.eye(n_nodes, dtype=dtype)
    deg = jnp.sum(a, axis=1)
    d_inv_sqrt = 1.0 / jnp.sqrt(deg)
    return (a * d_inv_sqrt[:, None]) * d_inv_sqrt[None, :]


if __name__ == "__main__":
    key = jax.random.PRNGKey(0)
    k_x, k_adj, k_p = jax.random.split(key, 3)

    n_nodes, nfeat, nhid, nemb = 256, 256, 128, 64

    x = jax.random.normal(k_x, (n_nodes, nfeat), dtype=jnp.float32)
    adj = build_normalized_adj(k_adj, n_nodes)
    params = init_params(k_p, nfeat, nhid, nemb)

    out = jax.jit(gcn_encoder_2)(x, adj, params)
    out = jax.block_until_ready(out)

    # Plain-JAX f32 reference of the same forward math (kernel uses bf16 MXU
    # operands with f32 accumulation, so compare with a modest tolerance).
    h_ref = jnp.maximum(adj @ (x @ params["w1"]) + params["b1"], 0.0)
    ref = adj @ (h_ref @ params["w2"]) + params["b2"]
    assert out.shape == (n_nodes, nemb)
    assert jnp.allclose(out, ref, atol=2e-2, rtol=2e-2), float(
        jnp.max(jnp.abs(out - ref)))

    print("KERNEL_OK")
</pallas_src>

<mosaic_0001>
module attributes {stable_mosaic.version = 11 : i64} {
  func.func @_gcn2_fused_kernel(%arg0: memref<256x256xbf16, #tpu.memory_space<vmem>>, %arg1: memref<256x256xbf16, #tpu.memory_space<vmem>>, %arg2: memref<256x128xbf16, #tpu.memory_space<vmem>>, %arg3: memref<1x128xf32, #tpu.memory_space<vmem>>, %arg4: memref<128x128xbf16, #tpu.memory_space<vmem>>, %arg5: memref<1x128xf32, #tpu.memory_space<vmem>>, %arg6: memref<256x128xf32, #tpu.memory_space<vmem>>) attributes {dimension_semantics = [], scalar_prefetch = 0 : i64, scratch_operands = 0 : i64, tpu.core_type = #tpu.core_type<tc>} {
    %c0 = arith.constant 0 : index
    %c0_0 = arith.constant 0 : index
    %0 = vector.load %arg1[%c0, %c0_0] : memref<256x256xbf16, #tpu.memory_space<vmem>>, vector<256x256xbf16>
    %c0_1 = arith.constant 0 : index
    %c0_2 = arith.constant 0 : index
    %1 = vector.load %arg0[%c0_1, %c0_2] : memref<256x256xbf16, #tpu.memory_space<vmem>>, vector<256x256xbf16>
    %c0_3 = arith.constant 0 : index
    %c0_4 = arith.constant 0 : index
    %2 = vector.load %arg2[%c0_3, %c0_4] : memref<256x128xbf16, #tpu.memory_space<vmem>>, vector<256x128xbf16>
    %cst = arith.constant dense<0.000000e+00> : vector<256x128xf32>
    %3 = tpu.matmul %1, %2, %cst {dimension_numbers = #tpu.dot_dimension_numbers<[1], [0], [0], [1], [0, 0, 1, 1], [], []>} : vector<256x256xbf16>, vector<256x128xbf16>, vector<256x128xf32> -> vector<256x128xf32>
    %4 = arith.truncf %3 : vector<256x128xf32> to vector<256x128xbf16>
    %cst_5 = arith.constant dense<0.000000e+00> : vector<256x128xf32>
    %5 = tpu.matmul %0, %4, %cst_5 {dimension_numbers = #tpu.dot_dimension_numbers<[1], [0], [0], [1], [0, 0, 1, 1], [], []>} : vector<256x256xbf16>, vector<256x128xbf16>, vector<256x128xf32> -> vector<256x128xf32>
    %c0_6 = arith.constant 0 : index
    %c0_7 = arith.constant 0 : index
    %6 = vector.load %arg3[%c0_6, %c0_7] : memref<1x128xf32, #tpu.memory_space<vmem>>, vector<1x128xf32>
    %7 = vector.broadcast %6 : vector<1x128xf32> to vector<256x128xf32>
    %8 = arith.addf %5, %7 : vector<256x128xf32>
    %cst_8 = arith.constant 0.000000e+00 : f32
    %9 = vector.broadcast %cst_8 : f32 to vector<256x128xf32>
    %10 = arith.maximumf %8, %9 : vector<256x128xf32>
    %11 = arith.truncf %10 : vector<256x128xf32> to vector<256x128xbf16>
    %c0_9 = arith.constant 0 : index
    %c0_10 = arith.constant 0 : index
    %12 = vector.load %arg4[%c0_9, %c0_10] : memref<128x128xbf16, #tpu.memory_space<vmem>>, vector<128x128xbf16>
    %cst_11 = arith.constant dense<0.000000e+00> : vector<256x128xf32>
    %13 = tpu.matmul %11, %12, %cst_11 {dimension_numbers = #tpu.dot_dimension_numbers<[1], [0], [0], [1], [0, 0, 1, 1], [], []>} : vector<256x128xbf16>, vector<128x128xbf16>, vector<256x128xf32> -> vector<256x128xf32>
    %14 = arith.truncf %13 : vector<256x128xf32> to vector<256x128xbf16>
    %cst_12 = arith.constant dense<0.000000e+00> : vector<256x128xf32>
    %15 = tpu.matmul %0, %14, %cst_12 {dimension_numbers = #tpu.dot_dimension_numbers<[1], [0], [0], [1], [0, 0, 1, 1], [], []>} : vector<256x256xbf16>, vector<256x128xbf16>, vector<256x128xf32> -> vector<256x128xf32>
    %c0_13 = arith.constant 0 : index
    %c0_14 = arith.constant 0 : index
    %16 = vector.load %arg5[%c0_13, %c0_14] : memref<1x128xf32, #tpu.memory_space<vmem>>, vector<1x128xf32>
    %17 = vector.broadcast %16 : vector<1x128xf32> to vector<256x128xf32>
    %18 = arith.addf %15, %17 : vector<256x128xf32>
    %c0_15 = arith.constant 0 : index
    %c0_16 = arith.constant 0 : index
    %19 = vector.load %arg6[%c0_15, %c0_16] : memref<256x128xf32, #tpu.memory_space<vmem>>, vector<256x128xf32>
    tpu.vector_store %arg6[%c0_15, %c0_16], %18 {strides = array<i32>} : memref<256x128xf32, #tpu.memory_space<vmem>>, vector<256x128xf32>,
    return
  }
}

</mosaic_0001>

<bundles_post_ra>
// kernel: gcn_encoder_2.1
= control target key start
LH: loop header
LB: loop body
LE: loop exit
PB: predicated region body
PF: predicated region fallthrough
CT: control target
= control target key end

     0   :  { %s2636_s2 = inlined_call_operand.vmem [shape: bf16[256,128], index: 2, kind: input, shape index: {}]   ;;  %s2637_s0 = inlined_call_operand.vmem [shape: bf16[256,256], index: 0, kind: input, shape index: {}]   ;;  %s2638_s1 = inlined_call_operand.vmem [shape: bf16[256,256], index: 1, kind: input, shape index: {}]   ;;  %s2639_s4 = inlined_call_operand.vmem [shape: bf16[128,128], index: 4, kind: input, shape index: {}]   ;;  %s2640_s3 = inlined_call_operand.vmem [shape: f32[1,128], index: 3, kind: input, shape index: {}]   ;;  %s2641_s5 = inlined_call_operand.vmem [shape: f32[1,128], index: 5, kind: input, shape index: {}]   ;;  %s2642_s6 = inlined_call_operand.vmem [shape: f32[256,128], index: 6, kind: output, shape index: {}]  }
   0x1   :  { %v1888_v0 = vld [vmem:[%s2636_s2 + $0x40] sm:$0xff]   ;;  %v1890_v2 = vld [vmem:[%s2636_s2 + $0x48] sm:$0xff]   ;;  %v1892_v4 = vld [vmem:[%s2636_s2 + $0x50] sm:$0xff]  }
   0x2   :  { %v1889_v1 = vld [vmem:[%s2636_s2] sm:$0xff]   ;;  %1464 = vmatprep.subr.bf16.mxu0 %v1888_v0  ;;  %v1891_v3 = vld [vmem:[%s2636_s2 + $0x8] sm:$0xff]   ;;  %v1893_v5 = vld [vmem:[%s2636_s2 + $0x10] sm:$0xff]  }
   0x3   :  { %1465 = vmatpush3.bf16.msra.mxu0 %v1889_v1  ;;  %v1894_v6 = vld [vmem:[%s2636_s2 + $0x58] sm:$0xff]   ;;  %v1896_v8 = vld [vmem:[%s2636_s2 + $0x60] sm:$0xff]   ;;  %v1898_v10 = vld [vmem:[%s2636_s2 + $0x68] sm:$0xff]  }
   0x4   :  { %1466 = vmatprep.subr.bf16.mxu0 %v1890_v2  ;;  %v1895_v7 = vld [vmem:[%s2636_s2 + $0x18] sm:$0xff]   ;;  %v1897_v9 = vld [vmem:[%s2636_s2 + $0x20] sm:$0xff]   ;;  %v1899_v12 = vld [vmem:[%s2636_s2 + $0x28] sm:$0xff]  }
   0x5   :  { %v1906_v11 = vld [vmem:[%s2637_s0 + $0x4] ss:$8 sps:$4 sm:$0xff]   ;;  %v1900_v13 = vld [vmem:[%s2636_s2 + $0x70] sm:$0xff]   ;;  %v1902_v15 = vld [vmem:[%s2636_s2 + $0x78] sm:$0xff]  }
   0x6   :  { %408 = vmatprep.mubr.bf16.mxu0 %v1906_v11  ;;  %v1901_v14 = vld [vmem:[%s2636_s2 + $0x30] sm:$0xff]   ;;  %v1903_v16 = vld [vmem:[%s2636_s2 + $0x38] sm:$0xff]   ;;  %v1904_v17 = vld [vmem:[%s2637_s0] ss:$8 sps:$4 sm:$0xff]  }
   0x7   :  { %1467 = vmatpush3.bf16.msra.mxu0 %v1891_v3  ;;  %v1907_v18 = vld [vmem:[%s2637_s0 + $0x14] ss:$8 sps:$4 sm:$0xff]   ;;  %v1909_v19 = vld [vmem:[%s2637_s0 + $0x10] ss:$8 sps:$4 sm:$0xff]   ;;  %v1910_v20 = vld [vmem:[%s2637_s0 + $0x24] ss:$8 sps:$4 sm:$0xff]  }
   0x8   :  { %1468 = vmatprep.subr.bf16.mxu0 %v1892_v4  ;;  %v1912_v21 = vld [vmem:[%s2637_s0 + $0x20] ss:$8 sps:$4 sm:$0xff]   ;;  %v1913_v22 = vld [vmem:[%s2637_s0 + $0x34] ss:$8 sps:$4 sm:$0xff]   ;;  %v1915_v23 = vld [vmem:[%s2637_s0 + $0x30] ss:$8 sps:$4 sm:$0xff]  }
   0x9   :  { %v1916_v24 = vld [vmem:[%s2637_s0 + $0x44] ss:$8 sps:$4 sm:$0xff]   ;;  %v1918_v25 = vld [vmem:[%s2637_s0 + $0x40] ss:$8 sps:$4 sm:$0xff]   ;;  %v1919_v26 = vld [vmem:[%s2637_s0 + $0x54] ss:$8 sps:$4 sm:$0xff]  }
   0xa   :  { %v1921_v27 = vld [vmem:[%s2637_s0 + $0x50] ss:$8 sps:$4 sm:$0xff]   ;;  %v1922_v28 = vld [vmem:[%s2637_s0 + $0x64] ss:$8 sps:$4 sm:$0xff]   ;;  %v1924_v29 = vld [vmem:[%s2637_s0 + $0x60] ss:$8 sps:$4 sm:$0xff]  }
   0xb   :  { %1469 = vmatpush3.bf16.msra.mxu0 %v1893_v5  ;;  %v1925_v30 = vld [vmem:[%s2637_s0 + $0x74] ss:$8 sps:$4 sm:$0xff]   ;;  %v1927_v31 = vld [vmem:[%s2637_s0 + $0x70] ss:$8 sps:$4 sm:$0xff]   ;;  %v1928_v32 = vld [vmem:[%s2637_s0 + $0x84] ss:$8 sps:$4 sm:$0xff]  }
   0xc   :  { %1470 = vmatprep.subr.bf16.mxu0 %v1894_v6  ;;  %v1930_v33 = vld [vmem:[%s2637_s0 + $0x80] ss:$8 sps:$4 sm:$0xff]   ;;  %v1931_v34 = vld [vmem:[%s2637_s0 + $0x94] ss:$8 sps:$4 sm:$0xff]   ;;  %v1933_v35 = vld [vmem:[%s2637_s0 + $0x90] ss:$8 sps:$4 sm:$0xff]  }
   0xd   :  { %v1934_v36 = vld [vmem:[%s2637_s0 + $0xa4] ss:$8 sps:$4 sm:$0xff]   ;;  %v1936_v37 = vld [vmem:[%s2637_s0 + $0xa0] ss:$8 sps:$4 sm:$0xff]   ;;  %v1937_v38 = vld [vmem:[%s2637_s0 + $0xb4] ss:$8 sps:$4 sm:$0xff]  }
   0xe   :  { %v1939_v39 = vld [vmem:[%s2637_s0 + $0xb0] ss:$8 sps:$4 sm:$0xff]   ;;  %v1940_v40 = vld [vmem:[%s2637_s0 + $0xc4] ss:$8 sps:$4 sm:$0xff]   ;;  %v1942_v41 = vld [vmem:[%s2637_s0 + $0xc0] ss:$8 sps:$4 sm:$0xff]  }
   0xf   :  { %1471 = vmatpush3.bf16.msra.mxu0 %v1895_v7  ;;  %v1943_v42 = vld [vmem:[%s2637_s0 + $0xd4] ss:$8 sps:$4 sm:$0xff]   ;;  %v1945_v43 = vld [vmem:[%s2637_s0 + $0xd0] ss:$8 sps:$4 sm:$0xff]   ;;  %v1946_v44 = vld [vmem:[%s2637_s0 + $0xe4] ss:$8 sps:$4 sm:$0xff]  }
  0x10   :  { %1472 = vmatprep.subr.bf16.mxu0 %v1896_v8  ;;  %v1948_v45 = vld [vmem:[%s2637_s0 + $0xe0] ss:$8 sps:$4 sm:$0xff]   ;;  %v1949_v46 = vld [vmem:[%s2637_s0 + $0xf4] ss:$8 sps:$4 sm:$0xff]   ;;  %v1951_v47 = vld [vmem:[%s2637_s0 + $0xf0] ss:$8 sps:$4 sm:$0xff]  }
  0x11   :  { %v2191_v52 = vld [vmem:[%s2638_s1 + $0x4] ss:$8 sps:$4 sm:$0xff]  }
  0x12   :  { %v1957_v54 = vld [vmem:[%s2638_s1 + $0x44] ss:$8 sps:$4 sm:$0xff]  }
  0x13   :  { %1473 = vmatpush3.bf16.msra.mxu0 %v1897_v9  ;;  %784 = vmatprep.mubr.bf16.mxu1 %v1957_v54 }
  0x14   :  { %1474 = vmatprep.subr.bf16.mxu0 %v1898_v10 }
  0x17   :  { %1475 = vmatpush3.bf16.msra.mxu0 %v1899_v12 }
  0x18   :  { %1476 = vmatprep.subr.bf16.mxu0 %v1900_v13 }
  0x1b   :  { %1477 = vmatpush3.bf16.msra.mxu0 %v1901_v14 }
  0x1c   :  { %1478 = vmatprep.subr.bf16.mxu0 %v1902_v15 }
  0x1f   :  { %1479 = vmatpush3.bf16.msra.mxu0 %v1903_v16 }
  0x22   :  { %409 = vmatmul.mubr.bf16.vlgmr.msra.gmra.mrb[0].mxu0 %v1904_v17 }
  0x23   :  { %416 = vmatprep.mubr.bf16.mxu0 %v1907_v18 }
  0x2a   :  { %417 = vmatmul.mubr.bf16.gmra.mrb[4].mxu0 %v1909_v19 }
  0x2b   :  { %424 = vmatprep.mubr.bf16.mxu0 %v1910_v20 }
  0x32   :  { %425 = vmatmul.mubr.bf16.gmra.mrb[8].mxu0 %v1912_v21 }
  0x33   :  { %432 = vmatprep.mubr.bf16.mxu0 %v1913_v22 }
  0x3a   :  { %433 = vmatmul.mubr.bf16.gmra.mrb[12].mxu0 %v1915_v23 }
  0x3b   :  { %440 = vmatprep.mubr.bf16.mxu0 %v1916_v24 }
  0x42   :  { %441 = vmatmul.mubr.bf16.gmra.mrb[16].mxu0 %v1918_v25 }
  0x43   :  { %448 = vmatprep.mubr.bf16.mxu0 %v1919_v26 }
  0x4a   :  { %449 = vmatmul.mubr.bf16.gmra.mrb[20].mxu0 %v1921_v27 }
  0x4b   :  { %456 = vmatprep.mubr.bf16.mxu0 %v1922_v28 }
  0x52   :  { %457 = vmatmul.mubr.bf16.gmra.mrb[24].mxu0 %v1924_v29 }
  0x53   :  { %464 = vmatprep.mubr.bf16.mxu0 %v1925_v30 }
  0x5a   :  { %465 = vmatmul.mubr.bf16.gmra.mrb[28].mxu0 %v1927_v31 }
  0x5b   :  { %472 = vmatprep.mubr.bf16.mxu0 %v1928_v32 }
  0x62   :  { %473 = vmatmul.mubr.bf16.gmra.mrb[32].mxu0 %v1930_v33 }
  0x63   :  { %480 = vmatprep.mubr.bf16.mxu0 %v1931_v34 }
  0x6a   :  { %481 = vmatmul.mubr.bf16.gmra.mrb[36].mxu0 %v1933_v35 }
  0x6b   :  { %488 = vmatprep.mubr.bf16.mxu0 %v1934_v36 }
  0x72   :  { %489 = vmatmul.mubr.bf16.gmra.mrb[40].mxu0 %v1936_v37 }
  0x73   :  { %496 = vmatprep.mubr.bf16.mxu0 %v1937_v38 }
  0x7a   :  { %497 = vmatmul.mubr.bf16.gmra.mrb[44].mxu0 %v1939_v39 }
  0x7b   :  { %504 = vmatprep.mubr.bf16.mxu0 %v1940_v40 }
  0x82   :  { %505 = vmatmul.mubr.bf16.gmra.mrb[48].mxu0 %v1942_v41 }
  0x83   :  { %512 = vmatprep.mubr.bf16.mxu0 %v1943_v42 }
  0x8a   :  { %513 = vmatmul.mubr.bf16.gmra.mrb[52].mxu0 %v1945_v43 }
  0x8b   :  { %520 = vmatprep.mubr.bf16.mxu0 %v1946_v44 }
  0x92   :  { %521 = vmatmul.mubr.bf16.gmra.mrb[56].mxu0 %v1948_v45 }
  0x93   :  { %528 = vmatprep.mubr.bf16.mxu0 %v1949_v46 }
  0x9a   :  { %529 = vmatmul.mubr.bf16.gmra.mrb[60].mxu0 %v1951_v47 }
  0x9b   :  { %752 = vmatprep.mubr.bf16.mxu0 %v2191_v52 }
  0xf5   :  { %v1480_v48 = vpop.f32.mrb[0].mxu0 }
  0xf6   :  { %v1481_v49 = vpop.f32.mrb[1].mxu0 }
  0xf7   :  { %v1482_v50 = vadd.f32 %v1481_v49, %v1480_v48  ;;  %v1483_v51 = vpop.f32.mrb[2].mxu0 }
  0xf8   :  { %v1484_v53 = vpop.f32.mrb[3].mxu0 }
  0xf9   :  { %v1485_v55 = vadd.f32 %v1484_v53, %v1483_v51 }
  0xfb   :  { %v537_v56 = vpack.c.bf16 %v1485_v55, %v1482_v50 }
  0xfd   :  { %v1486_v57 = vpop.f32.mrb[4].mxu0 }
  0xfe   :  { %v1487_v58 = vpop.f32.mrb[5].mxu0 }
  0xff   :  { %v1488_v59 = vadd.f32 %v1487_v58, %v1486_v57  ;;  %v1489_v60 = vpop.f32.mrb[6].mxu0 }
 0x100   :  { %v1490_v61 = vpop.f32.mrb[7].mxu0 }
 0x101   :  { %v1491_v62 = vadd.f32 %v1490_v61, %v1489_v60 }
 0x103   :  { %v2197_v63 = vpack.c.bf16 %v1491_v62, %v1488_v59 }
 0x105   :  { %v1492_v0 = vpop.f32.mrb[8].mxu0 }
 0x106   :  { %v1493_v1 = vpop.f32.mrb[9].mxu0 }
 0x107   :  { %v1494_v2 = vadd.f32 %v1493_v1, %v1492_v0  ;;  %v1495_v3 = vpop.f32.mrb[10].mxu0 }
 0x108   :  { %v1496_v4 = vpop.f32.mrb[11].mxu0 }
 0x109   :  { %v1497_v5 = vadd.f32 %v1496_v4, %v1495_v3 }
 0x10b   :  { %v2199_v6 = vpack.c.bf16 %v1497_v5, %v1494_v2 }
 0x10d   :  { %v1498_v7 = vpop.f32.mrb[12].mxu0 }
 0x10e   :  { %v1499_v8 = vpop.f32.mrb[13].mxu0 }
 0x10f   :  { %v1500_v9 = vadd.f32 %v1499_v8, %v1498_v7  ;;  %v1501_v10 = vpop.f32.mrb[14].mxu0 }
 0x110   :  { %v1502_v11 = vpop.f32.mrb[15].mxu0 }
 0x111   :  { %v1503_v12 = vadd.f32 %v1502_v11, %v1501_v10 }
 0x113   :  { %v2201_v13 = vpack.c.bf16 %v1503_v12, %v1500_v9 }
 0x115   :  { %v1504_v14 = vpop.f32.mrb[16].mxu0 }
 0x116   :  { %v1505_v15 = vpop.f32.mrb[17].mxu0 }
 0x117   :  { %v1506_v16 = vadd.f32 %v1505_v15, %v1504_v14  ;;  %v1507_v17 = vpop.f32.mrb[18].mxu0 }
 0x118   :  { %v1508_v18 = vpop.f32.mrb[19].mxu0 }
 0x119   :  { %v1509_v19 = vadd.f32 %v1508_v18, %v1507_v17 }
 0x11b   :  { %v2203_v20 = vpack.c.bf16 %v1509_v19, %v1506_v16 }
 0x11d   :  { %v1510_v21 = vpop.f32.mrb[20].mxu0 }
 0x11e   :  { %v1511_v22 = vpop.f32.mrb[21].mxu0 }
 0x11f   :  { %v1512_v23 = vadd.f32 %v1511_v22, %v1510_v21  ;;  %v1513_v24 = vpop.f32.mrb[22].mxu0 }
 0x120   :  { %v1514_v25 = vpop.f32.mrb[23].mxu0 }
 0x121   :  { %v1515_v26 = vadd.f32 %v1514_v25, %v1513_v24 }
 0x123   :  { %v2205_v27 = vpack.c.bf16 %v1515_v26, %v1512_v23 }
 0x125   :  { %v1516_v28 = vpop.f32.mrb[24].mxu0 }
 0x126   :  { %v1517_v29 = vpop.f32.mrb[25].mxu0 }
 0x127   :  { %v1518_v30 = vadd.f32 %v1517_v29, %v1516_v28  ;;  %v1519_v31 = vpop.f32.mrb[26].mxu0 }
 0x128   :  { %v1520_v32 = vpop.f32.mrb[27].mxu0 }
 0x129   :  { %v1521_v33 = vadd.f32 %v1520_v32, %v1519_v31 }
 0x12b   :  { %v2207_v34 = vpack.c.bf16 %v1521_v33, %v1518_v30 }
 0x12d   :  { %v1522_v35 = vpop.f32.mrb[28].mxu0 }
 0x12e   :  { %v1523_v36 = vpop.f32.mrb[29].mxu0 }
 0x12f   :  { %v1524_v37 = vadd.f32 %v1523_v36, %v1522_v35  ;;  %v1525_v38 = vpop.f32.mrb[30].mxu0 }
 0x130   :  { %v1526_v39 = vpop.f32.mrb[31].mxu0 }
 0x131   :  { %v1527_v40 = vadd.f32 %v1526_v39, %v1525_v38  ;;  %v2241_v38 = vld [vmem:[%s2638_s1 + $0x14] ss:$8 sps:$4 sm:$0xff]  }
 0x132   :  { %v2246_v39 = vld [vmem:[%s2638_s1 + $0x54] ss:$8 sps:$4 sm:$0xff]  }
 0x133   :  { %v2209_v41 = vpack.c.bf16 %v1527_v40, %v1524_v37  ;;  %v2229_v37 = vld [vmem:[%s2638_s1] ss:$8 sps:$4 sm:$0xff]  }
 0x134   :  { %v2001_v40 = vld [vmem:[%s2639_s4 + $0x8] sm:$0xff]  }
 0x135   :  { %v1528_v42 = vpop.f32.mrb[32].mxu0 }
 0x136   :  { %v1529_v43 = vpop.f32.mrb[33].mxu0 }
 0x137   :  { %v1530_v44 = vadd.f32 %v1529_v43, %v1528_v42  ;;  %v1531_v45 = vpop.f32.mrb[34].mxu0  ;;  %v2261_v42 = vld [vmem:[%s2638_s1 + $0x10] ss:$8 sps:$4 sm:$0xff]  }
 0x138   :  { %v1532_v46 = vpop.f32.mrb[35].mxu0  ;;  %v2266_v43 = vld [vmem:[%s2638_s1 + $0x50] ss:$8 sps:$4 sm:$0xff]  }
 0x139   :  { %v1533_v47 = vadd.f32 %v1532_v46, %v1531_v45  ;;  %v2276_v45 = vld [vmem:[%s2638_s1 + $0x64] ss:$8 sps:$4 sm:$0xff]   ;;  %v2003_v46 = vld [vmem:[%s2639_s4 + $0x18] sm:$0xff]  }
 0x13b   :  { %v545_v48 = vpack.c.bf16 %v1533_v47, %v1530_v44  ;;  %v2271_v44 = vld [vmem:[%s2638_s1 + $0x24] ss:$8 sps:$4 sm:$0xff]   ;;  %v2288_v47 = vld [vmem:[%s2638_s1 + $0x20] ss:$8 sps:$4 sm:$0xff]  }
 0x13d   :  { %v1534_v49 = vpop.f32.mrb[36].mxu0  ;;  %1576 = vmatprep.subr.bf16.mxu0 %v545_v48  ;;  %1872 = vmatprep.subr.bf16.mxu1 %v545_v48  ;;  %v2293_v48 = vld [vmem:[%s2638_s1 + $0x60] ss:$8 sps:$4 sm:$0xff]  }
 0x13e   :  { %v1535_v50 = vpop.f32.mrb[37].mxu0  ;;  %1577 = vmatpush3.bf16.msra.mxu0 %v537_v56  ;;  %1880 = vmatpush3.bf16.msra.mxu1 %v537_v56 }
 0x13f   :  { %v1536_v51 = vadd.f32 %v1535_v50, %v1534_v49  ;;  %v1537_v53 = vpop.f32.mrb[38].mxu0  ;;  %v2298_v49 = vld [vmem:[%s2638_s1 + $0x34] ss:$8 sps:$4 sm:$0xff]  }
 0x140   :  { %v1538_v54 = vpop.f32.mrb[39].mxu0  ;;  %v2303_v50 = vld [vmem:[%s2638_s1 + $0x74] ss:$8 sps:$4 sm:$0xff]  }
 0x141   :  { %v1539_v55 = vadd.f32 %v1538_v54, %v1537_v53  ;;  %v2317_v53 = vld [vmem:[%s2638_s1 + $0x70] ss:$8 sps:$4 sm:$0xff]   ;;  %v2322_v54 = vld [vmem:[%s2638_s1 + $0x84] ss:$8 sps:$4 sm:$0xff]  }
 0x143   :  { %v546_v57 = vpack.c.bf16 %v1539_v55, %v1536_v51  ;;  %v2312_v51 = vld [vmem:[%s2638_s1 + $0x30] ss:$8 sps:$4 sm:$0xff]   ;;  %v2330_v55 = vld [vmem:[%s2638_s1 + $0x80] ss:$8 sps:$4 sm:$0xff]  }
 0x145   :  { %v1540_v58 = vpop.f32.mrb[40].mxu0  ;;  %1578 = vmatprep.subr.bf16.mxu0 %v546_v57  ;;  %1873 = vmatprep.subr.bf16.mxu1 %v546_v57  ;;  %v2335_v57 = vld [vmem:[%s2638_s1 + $0x94] ss:$8 sps:$4 sm:$0xff]  }
 0x146   :  { %v1541_v59 = vpop.f32.mrb[41].mxu0  ;;  %1579 = vmatpush3.bf16.msra.mxu0 %v2197_v63  ;;  %1881 = vmatpush3.bf16.msra.mxu1 %v2197_v63 }
 0x147   :  { %v1542_v60 = vadd.f32 %v1541_v59, %v1540_v58  ;;  %v1543_v61 = vpop.f32.mrb[42].mxu0  ;;  %v2342_v58 = vld [vmem:[%s2638_s1 + $0x90] ss:$8 sps:$4 sm:$0xff]   ;;  %v2347_v59 = vld [vmem:[%s2638_s1 + $0xa4] ss:$8 sps:$4 sm:$0xff]  }
 0x148   :  { %v1544_v62 = vpop.f32.mrb[43].mxu0 }
 0x149   :  { %v1545_v0 = vadd.f32 %v1544_v62, %v1543_v61  ;;  %v2359_v61 = vld [vmem:[%s2638_s1 + $0xb4] ss:$8 sps:$4 sm:$0xff]   ;;  %v2366_v62 = vld [vmem:[%s2638_s1 + $0xb0] ss:$8 sps:$4 sm:$0xff]  }
 0x14b   :  { %v547_v1 = vpack.c.bf16 %v1545_v0, %v1542_v60  ;;  %v2354_v60 = vld [vmem:[%s2638_s1 + $0xa0] ss:$8 sps:$4 sm:$0xff]   ;;  %v2371_v0 = vld [vmem:[%s2638_s1 + $0xc4] ss:$8 sps:$4 sm:$0xff]  }
 0x14d   :  { %v1546_v2 = vpop.f32.mrb[44].mxu0  ;;  %1580 = vmatprep.subr.bf16.mxu0 %v547_v1  ;;  %1874 = vmatprep.subr.bf16.mxu1 %v547_v1  ;;  %v2378_v1 = vld [vmem:[%s2638_s1 + $0xc0] ss:$8 sps:$4 sm:$0xff]  }
 0x14e   :  { %v1547_v56 = vpop.f32.mrb[45].mxu0  ;;  %1581 = vmatpush3.bf16.msra.mxu0 %v2199_v6  ;;  %1882 = vmatpush3.bf16.msra.mxu1 %v2199_v6 }
 0x14f   :  { %v1548_v3 = vadd.f32 %v1547_v56, %v1546_v2  ;;  %v1549_v4 = vpop.f32.mrb[46].mxu0  ;;  %v2383_v2 = vld [vmem:[%s2638_s1 + $0xd4] ss:$8 sps:$4 sm:$0xff]   ;;  %v2390_v56 = vld [vmem:[%s2638_s1 + $0xd0] ss:$8 sps:$4 sm:$0xff]  }
 0x150   :  { %v1550_v5 = vpop.f32.mrb[47].mxu0 }
 0x151   :  { %v1551_v7 = vadd.f32 %v1550_v5, %v1549_v4  ;;  %v2402_v4 = vld [vmem:[%s2638_s1 + $0xe0] ss:$8 sps:$4 sm:$0xff]   ;;  %v2407_v5 = vld [vmem:[%s2638_s1 + $0xf4] ss:$8 sps:$4 sm:$0xff]  }
 0x153   :  { %v548_v8 = vpack.c.bf16 %v1551_v7, %v1548_v3  ;;  %v2395_v3 = vld [vmem:[%s2638_s1 + $0xe4] ss:$8 sps:$4 sm:$0xff]   ;;  %v2414_v7 = vld [vmem:[%s2638_s1 + $0xf0] ss:$8 sps:$4 sm:$0xff]  }
 0x155   :  { %v1552_v9 = vpop.f32.mrb[48].mxu0  ;;  %1582 = vmatprep.subr.bf16.mxu0 %v548_v8  ;;  %1875 = vmatprep.subr.bf16.mxu1 %v548_v8  ;;  %v2004_v8 = vld [vmem:[%s2639_s4 + $0x20] sm:$0xff]  }
 0x156   :  { %v1553_v63 = vpop.f32.mrb[49].mxu0  ;;  %1583 = vmatpush3.bf16.msra.mxu0 %v2201_v13  ;;  %1883 = vmatpush3.bf16.msra.mxu1 %v2201_v13 }
 0x157   :  { %v1554_v10 = vadd.f32 %v1553_v63, %v1552_v9  ;;  %v1555_v11 = vpop.f32.mrb[50].mxu0  ;;  %v2005_v9 = vld [vmem:[%s2639_s4 + $0x28] sm:$0xff]   ;;  %v2006_v63 = vld [vmem:[%s2639_s4 + $0x30] sm:$0xff]  }
 0x158   :  { %v1556_v12 = vpop.f32.mrb[51].mxu0 }
 0x159   :  { %v1557_v14 = vadd.f32 %v1556_v12, %v1555_v11  ;;  %v2433_v12 = vld [vmem:[%s2640_s3] ss:$0 sm:$0xff] }
 0x15b   :  { %v549_v15 = vpack.c.bf16 %v1557_v14, %v1554_v10 }
 0x15d   :  { %v1558_v16 = vpop.f32.mrb[52].mxu0  ;;  %1584 = vmatprep.subr.bf16.mxu0 %v549_v15  ;;  %1876 = vmatprep.subr.bf16.mxu1 %v549_v15 }
 0x15e   :  { %v1559_v6 = vpop.f32.mrb[53].mxu0  ;;  %1585 = vmatpush3.bf16.msra.mxu0 %v2203_v20  ;;  %1884 = vmatpush3.bf16.msra.mxu1 %v2203_v20 }
 0x15f   :  { %v1560_v17 = vadd.f32 %v1559_v6, %v1558_v16  ;;  %v1561_v18 = vpop.f32.mrb[54].mxu0 }
 0x160   :  { %v1562_v19 = vpop.f32.mrb[55].mxu0 }
 0x161   :  { %v1563_v21 = vadd.f32 %v1562_v19, %v1561_v18 }
 0x163   :  { %v550_v22 = vpack.c.bf16 %v1563_v21, %v1560_v17 }
 0x165   :  { %v1564_v23 = vpop.f32.mrb[56].mxu0  ;;  %1586 = vmatprep.subr.bf16.mxu0 %v550_v22  ;;  %1877 = vmatprep.subr.bf16.mxu1 %v550_v22 }
 0x166   :  { %v1565_v13 = vpop.f32.mrb[57].mxu0  ;;  %1587 = vmatpush3.bf16.msra.mxu0 %v2205_v27  ;;  %1885 = vmatpush3.bf16.msra.mxu1 %v2205_v27  ;;  %v2000_v27 = vld [vmem:[%s2639_s4] sm:$0xff]  }
 0x167   :  { %v1566_v24 = vadd.f32 %v1565_v13, %v1564_v23  ;;  %v1567_v25 = vpop.f32.mrb[58].mxu0 }
 0x168   :  { %v1568_v26 = vpop.f32.mrb[59].mxu0 }
 0x169   :  { %v1569_v28 = vadd.f32 %v1568_v26, %v1567_v25 }
 0x16b   :  { %v551_v29 = vpack.c.bf16 %v1569_v28, %v1566_v24 }
 0x16d   :  { %v1570_v30 = vpop.f32.mrb[60].mxu0  ;;  %1588 = vmatprep.subr.bf16.mxu0 %v551_v29  ;;  %1878 = vmatprep.subr.bf16.mxu1 %v551_v29 }
 0x16e   :  { %v1571_v20 = vpop.f32.mrb[61].mxu0  ;;  %1589 = vmatpush3.bf16.msra.mxu0 %v2207_v34  ;;  %1886 = vmatpush3.bf16.msra.mxu1 %v2207_v34  ;;  %v2234_v34 = vld [vmem:[%s2638_s1 + $0x40] ss:$8 sps:$4 sm:$0xff]  }
 0x16f   :  { %v1572_v31 = vadd.f32 %v1571_v20, %v1570_v30  ;;  %v1573_v32 = vpop.f32.mrb[62].mxu0 }
 0x170   :  { %v1574_v33 = vpop.f32.mrb[63].mxu0 }
 0x171   :  { %v1575_v35 = vadd.f32 %v1574_v33, %v1573_v32 }
 0x173   :  { %v552_v36 = vpack.c.bf16 %v1575_v35, %v1572_v31 }
 0x175   :  { %1590 = vmatprep.subr.bf16.mxu0 %v552_v36  ;;  %1879 = vmatprep.subr.bf16.mxu1 %v552_v36 }
 0x176   :  { %1591 = vmatpush3.bf16.msra.mxu0 %v2209_v41  ;;  %1887 = vmatpush3.bf16.msra.mxu1 %v2209_v41  ;;  %v2002_v41 = vld [vmem:[%s2639_s4 + $0x10] sm:$0xff]  }
 0x177   :  { %1824 = vmatprep.subr.bf16.mxu0 %v2000_v27 }
 0x179   :  { %753 = vmatmul.mubr.bf16.vlgmr.msra.gmra.mrb[64].mxu0 %v2229_v37  ;;  %785 = vmatmul.mubr.bf16.vlgmr.msra.gmra.mrb[0].mxu1 %v2234_v34 }
 0x17a   :  { %760 = vmatprep.mubr.bf16.mxu0 %v2241_v38  ;;  %792 = vmatprep.mubr.bf16.mxu1 %v2246_v39 }
 0x17b   :  { %1825 = vmatpush3.bf16.msra.mxu0 %v2000_v27 }
 0x17c   :  { %1826 = vmatprep.subr.bf16.mxu0 %v2001_v40 }
 0x17f   :  { %1827 = vmatpush3.bf16.msra.mxu0 %v2001_v40 }
 0x180   :  { %1828 = vmatprep.subr.bf16.mxu0 %v2002_v41 }
 0x181   :  { %761 = vmatmul.mubr.bf16.gmra.mrb[68].mxu0 %v2261_v42  ;;  %793 = vmatmul.mubr.bf16.gmra.mrb[4].mxu1 %v2266_v43 }
 0x182   :  { %768 = vmatprep.mubr.bf16.mxu0 %v2271_v44  ;;  %800 = vmatprep.mubr.bf16.mxu1 %v2276_v45 }
 0x183   :  { %1829 = vmatpush3.bf16.msra.mxu0 %v2002_v41 }
 0x184   :  { %1830 = vmatprep.subr.bf16.mxu0 %v2003_v46 }
 0x187   :  { %1831 = vmatpush3.bf16.msra.mxu0 %v2003_v46 }
 0x188   :  { %1832 = vmatprep.subr.bf16.mxu0 %v2004_v8 }
 0x189   :  { %769 = vmatmul.mubr.bf16.gmra.mrb[72].mxu0 %v2288_v47  ;;  %801 = vmatmul.mubr.bf16.gmra.mrb[8].mxu1 %v2293_v48 }
 0x18a   :  { %776 = vmatprep.mubr.bf16.mxu0 %v2298_v49  ;;  %808 = vmatprep.mubr.bf16.mxu1 %v2303_v50 }
 0x18b   :  { %1833 = vmatpush3.bf16.msra.mxu0 %v2004_v8 }
 0x18c   :  { %1834 = vmatprep.subr.bf16.mxu0 %v2005_v9 }
 0x18f   :  { %1835 = vmatpush3.bf16.msra.mxu0 %v2005_v9 }
 0x190   :  { %1836 = vmatprep.subr.bf16.mxu0 %v2006_v63 }
 0x191   :  { %777 = vmatmul.mubr.bf16.gmra.mrb[76].mxu0 %v2312_v51  ;;  %809 = vmatmul.mubr.bf16.gmra.mrb[12].mxu1 %v2317_v53 }
 0x192   :  { %816 = vmatprep.mubr.bf16.mxu1 %v2322_v54 }
 0x193   :  { %1837 = vmatpush3.bf16.msra.mxu0 %v2006_v63 }
 0x199   :  { %817 = vmatmul.mubr.bf16.gmra.mrb[16].mxu1 %v2330_v55 }
 0x19a   :  { %824 = vmatprep.mubr.bf16.mxu1 %v2335_v57 }
 0x1a1   :  { %825 = vmatmul.mubr.bf16.gmra.mrb[20].mxu1 %v2342_v58 }
 0x1a2   :  { %832 = vmatprep.mubr.bf16.mxu1 %v2347_v59 }
 0x1a9   :  { %833 = vmatmul.mubr.bf16.gmra.mrb[24].mxu1 %v2354_v60 }
 0x1aa   :  { %840 = vmatprep.mubr.bf16.mxu1 %v2359_v61 }
 0x1b1   :  { %841 = vmatmul.mubr.bf16.gmra.mrb[28].mxu1 %v2366_v62 }
 0x1b2   :  { %848 = vmatprep.mubr.bf16.mxu1 %v2371_v0 }
 0x1b9   :  { %849 = vmatmul.mubr.bf16.gmra.mrb[32].mxu1 %v2378_v1 }
 0x1ba   :  { %856 = vmatprep.mubr.bf16.mxu1 %v2383_v2 }
 0x1c1   :  { %857 = vmatmul.mubr.bf16.gmra.mrb[36].mxu1 %v2390_v56 }
 0x1c2   :  { %864 = vmatprep.mubr.bf16.mxu1 %v2395_v3 }
 0x1c9   :  { %865 = vmatmul.mubr.bf16.gmra.mrb[40].mxu1 %v2402_v4 }
 0x1ca   :  { %872 = vmatprep.mubr.bf16.mxu1 %v2407_v5 }
 0x1d1   :  { %873 = vmatmul.mubr.bf16.gmra.mrb[44].mxu1 %v2414_v7 }
 0x1d2   :  { %1209 = vmatprep.mubr.bf16.mxu1 %v2191_v52  ;;  %v2007_v52 = vld [vmem:[%s2639_s4 + $0x38] sm:$0xff]  }
 0x1d3   :  { %1838 = vmatprep.subr.bf16.mxu0 %v2007_v52 }
 0x1d4   :  { %1839 = vmatpush3.bf16.msra.mxu0 %v2007_v52 }
 0x24c   :  { %v1592_v10 = vpop.f32.mrb[64].mxu0  ;;  %v1616_v11 = vpop.f32.mrb[0].mxu1 }
 0x24d   :  { %v1593_v14 = vpop.f32.mrb[65].mxu0  ;;  %v1617_v15 = vpop.f32.mrb[1].mxu1 }
 0x24e   :  { %v1594_v16 = vadd.f32 %v1593_v14, %v1592_v10  ;;  %v1595_v6 = vpop.f32.mrb[66].mxu0  ;;  %v1618_v17 = vadd.f32 %v1617_v15, %v1616_v11  ;;  %v1619_v18 = vpop.f32.mrb[2].mxu1 }
 0x24f   :  { %v1596_v19 = vpop.f32.mrb[67].mxu0  ;;  %v1620_v21 = vpop.f32.mrb[3].mxu1 }
 0x250   :  { %v755_v22 = vadd.f32 %v1594_v16, %v2433_v12  ;;  %v1597_v23 = vadd.f32 %v1596_v19, %v1595_v6  ;;  %v787_v13 = vadd.f32 %v1618_v17, %v2433_v12  ;;  %v1621_v24 = vadd.f32 %v1620_v21, %v1619_v18 }
 0x252   :  { %v881_v25 = vmax.f32 %v755_v22, 0.0  ;;  %v758_v26 = vadd.f32 %v1597_v23, %v2433_v12  ;;  %v790_v28 = vadd.f32 %v1621_v24, %v2433_v12  ;;  %v889_v20 = vmax.f32 %v787_v13, 0.0 }
 0x254   :  { %v882_v29 = vmax.f32 %v758_v26, 0.0  ;;  %v1598_v30 = vpop.f32.mrb[68].mxu0  ;;  %v890_v31 = vmax.f32 %v790_v28, 0.0  ;;  %v1622_v32 = vpop.f32.mrb[4].mxu1 }
 0x255   :  { %v1599_v33 = vpop.f32.mrb[69].mxu0  ;;  %v1623_v35 = vpop.f32.mrb[5].mxu1 }
 0x256   :  { %v1600_v36 = vadd.f32 %v1599_v33, %v1598_v30  ;;  %v1601_v27 = vpop.f32.mrb[70].mxu0  ;;  %v913_v40 = vpack.c.bf16 %v882_v29, %v881_v25  ;;  %v1624_v41 = vadd.f32 %v1623_v35, %v1622_v32  ;;  %v1625_v46 = vpop.f32.mrb[6].mxu1  ;;  %v2439_v8 = vpack.c.bf16 %v890_v31, %v889_v20 }
 0x257   :  { %v1602_v9 = vpop.f32.mrb[71].mxu0  ;;  %v1626_v63 = vpop.f32.mrb[7].mxu1 }
 0x258   :  { %v763_v52 = vadd.f32 %v1600_v36, %v2433_v12  ;;  %v1603_v10 = vadd.f32 %v1602_v9, %v1601_v27  ;;  %1840 = vmatprep.mubr.bf16.mxu0 %v913_v40  ;;  %v795_v11 = vadd.f32 %v1624_v41, %v2433_v12  ;;  %v1627_v14 = vadd.f32 %v1626_v63, %v1625_v46 }
 0x25a   :  { %v883_v15 = vmax.f32 %v763_v52, 0.0  ;;  %v766_v16 = vadd.f32 %v1603_v10, %v2433_v12  ;;  %v798_v6 = vadd.f32 %v1627_v14, %v2433_v12  ;;  %v891_v19 = vmax.f32 %v795_v11, 0.0 }
 0x25c   :  { %v884_v17 = vmax.f32 %v766_v16, 0.0  ;;  %v1604_v18 = vpop.f32.mrb[72].mxu0  ;;  %v892_v21 = vmax.f32 %v798_v6, 0.0  ;;  %v1628_v22 = vpop.f32.mrb[8].mxu1 }
 0x25d   :  { %v1605_v23 = vpop.f32.mrb[73].mxu0  ;;  %v1629_v13 = vpop.f32.mrb[9].mxu1 }
 0x25e   :  { %v914_v24 = vpack.c.bf16 %v884_v17, %v883_v15  ;;  %v1606_v25 = vadd.f32 %v1605_v23, %v1604_v18  ;;  %v1607_v26 = vpop.f32.mrb[74].mxu0  ;;  %v1630_v28 = vadd.f32 %v1629_v13, %v1628_v22  ;;  %v1631_v29 = vpop.f32.mrb[10].mxu1  ;;  %v918_v30 = vpack.c.bf16 %v892_v21, %v891_v19 }
 0x25f   :  { %v1608_v20 = vpop.f32.mrb[75].mxu0  ;;  %v1632_v31 = vpop.f32.mrb[11].mxu1 }
 0x260   :  { %v771_v32 = vadd.f32 %v1606_v25, %v2433_v12  ;;  %v1609_v33 = vadd.f32 %v1608_v20, %v1607_v26  ;;  %1841 = vmatmul.mubr.bf16.vlgmr.msra.gmra.mrb[80].mxu0 %v914_v24  ;;  %v803_v35 = vadd.f32 %v1630_v28, %v2433_v12  ;;  %v1633_v36 = vadd.f32 %v1632_v31, %v1631_v29 }
 0x262   :  { %v885_v27 = vmax.f32 %v771_v32, 0.0  ;;  %v774_v40 = vadd.f32 %v1609_v33, %v2433_v12  ;;  %v806_v41 = vadd.f32 %v1633_v36, %v2433_v12  ;;  %v893_v63 = vmax.f32 %v803_v35, 0.0 }
 0x264   :  { %v886_v46 = vmax.f32 %v774_v40, 0.0  ;;  %v1610_v9 = vpop.f32.mrb[76].mxu0  ;;  %v894_v52 = vmax.f32 %v806_v41, 0.0  ;;  %v1634_v10 = vpop.f32.mrb[12].mxu1 }
 0x265   :  { %v1611_v11 = vpop.f32.mrb[77].mxu0  ;;  %v1635_v14 = vpop.f32.mrb[13].mxu1 }
 0x266   :  { %v1612_v15 = vadd.f32 %v1611_v11, %v1610_v9  ;;  %v1613_v16 = vpop.f32.mrb[78].mxu0  ;;  %v915_v6 = vpack.c.bf16 %v886_v46, %v885_v27  ;;  %v1636_v17 = vadd.f32 %v1635_v14, %v1634_v10  ;;  %v1637_v18 = vpop.f32.mrb[14].mxu1  ;;  %v919_v19 = vpack.c.bf16 %v894_v52, %v893_v63 }
 0x267   :  { %v1614_v21 = vpop.f32.mrb[79].mxu0  ;;  %v1638_v22 = vpop.f32.mrb[15].mxu1 }
 0x268   :  { %v779_v23 = vadd.f32 %v1612_v15, %v2433_v12  ;;  %v1615_v13 = vadd.f32 %v1614_v21, %v1613_v16  ;;  %1844 = vmatprep.mubr.bf16.mxu0 %v915_v6  ;;  %v811_v24 = vadd.f32 %v1636_v17, %v2433_v12  ;;  %v1639_v25 = vadd.f32 %v1638_v22, %v1637_v18 }
 0x26a   :  { %v887_v26 = vmax.f32 %v779_v23, 0.0  ;;  %v782_v28 = vadd.f32 %v1615_v13, %v2433_v12  ;;  %v814_v29 = vadd.f32 %v1639_v25, %v2433_v12  ;;  %v895_v31 = vmax.f32 %v811_v24, 0.0 }
 0x26c   :  { %v888_v20 = vmax.f32 %v782_v28, 0.0  ;;  %v896_v32 = vmax.f32 %v814_v29, 0.0  ;;  %v1640_v33 = vpop.f32.mrb[16].mxu1 }
 0x26d   :  { %v1641_v35 = vpop.f32.mrb[17].mxu1 }
 0x26e   :  { %v916_v36 = vpack.c.bf16 %v888_v20, %v887_v26  ;;  %v1642_v27 = vadd.f32 %v1641_v35, %v1640_v33  ;;  %v1643_v40 = vpop.f32.mrb[18].mxu1  ;;  %v920_v41 = vpack.c.bf16 %v896_v32, %v895_v31 }
 0x26f   :  { %v1644_v46 = vpop.f32.mrb[19].mxu1 }
 0x270   :  { %1845 = vmatmul.mubr.bf16.gmra.mrb[84].mxu0 %v916_v36  ;;  %v819_v9 = vadd.f32 %v1642_v27, %v2433_v12  ;;  %v1645_v63 = vadd.f32 %v1644_v46, %v1643_v40 }
 0x271   :  { %1848 = vmatprep.mubr.bf16.mxu0 %v2439_v8 }
 0x272   :  { %v822_v52 = vadd.f32 %v1645_v63, %v2433_v12  ;;  %v897_v10 = vmax.f32 %v819_v9, 0.0 }
 0x274   :  { %v898_v11 = vmax.f32 %v822_v52, 0.0  ;;  %v1646_v14 = vpop.f32.mrb[20].mxu1 }
 0x275   :  { %v1647_v15 = vpop.f32.mrb[21].mxu1 }
 0x276   :  { %v1648_v16 = vadd.f32 %v1647_v15, %v1646_v14  ;;  %v1649_v6 = vpop.f32.mrb[22].mxu1  ;;  %v921_v17 = vpack.c.bf16 %v898_v11, %v897_v10 }
 0x277   :  { %v1650_v18 = vpop.f32.mrb[23].mxu1 }
 0x278   :  { %1849 = vmatmul.mubr.bf16.gmra.mrb[88].mxu0 %v918_v30  ;;  %v827_v21 = vadd.f32 %v1648_v16, %v2433_v12  ;;  %v1651_v22 = vadd.f32 %v1650_v18, %v1649_v6 }
 0x279   :  { %1852 = vmatprep.mubr.bf16.mxu0 %v919_v19 }
 0x27a   :  { %v830_v23 = vadd.f32 %v1651_v22, %v2433_v12  ;;  %v899_v13 = vmax.f32 %v827_v21, 0.0 }
 0x27c   :  { %v900_v24 = vmax.f32 %v830_v23, 0.0  ;;  %v1652_v8 = vpop.f32.mrb[24].mxu1 }
 0x27d   :  { %v1653_v25 = vpop.f32.mrb[25].mxu1 }
 0x27e   :  { %v1654_v26 = vadd.f32 %v1653_v25, %v1652_v8  ;;  %v1655_v28 = vpop.f32.mrb[26].mxu1  ;;  %v922_v29 = vpack.c.bf16 %v900_v24, %v899_v13 }
 0x27f   :  { %v1656_v20 = vpop.f32.mrb[27].mxu1 }
 0x280   :  { %1853 = vmatmul.mubr.bf16.gmra.mrb[92].mxu0 %v920_v41  ;;  %v835_v31 = vadd.f32 %v1654_v26, %v2433_v12  ;;  %v1657_v32 = vadd.f32 %v1656_v20, %v1655_v28 }
 0x281   :  { %1856 = vmatprep.mubr.bf16.mxu0 %v921_v17 }
 0x282   :  { %v838_v30 = vadd.f32 %v1657_v32, %v2433_v12  ;;  %v901_v33 = vmax.f32 %v835_v31, 0.0 }
 0x284   :  { %v902_v35 = vmax.f32 %v838_v30, 0.0  ;;  %v1658_v19 = vpop.f32.mrb[28].mxu1 }
 0x285   :  { %v1659_v36 = vpop.f32.mrb[29].mxu1 }
 0x286   :  { %v1660_v27 = vadd.f32 %v1659_v36, %v1658_v19  ;;  %v1661_v40 = vpop.f32.mrb[30].mxu1  ;;  %v923_v46 = vpack.c.bf16 %v902_v35, %v901_v33 }
 0x287   :  { %v1662_v9 = vpop.f32.mrb[31].mxu1 }
 0x288   :  { %v843_v63 = vadd.f32 %v1660_v27, %v2433_v12  ;;  %v1663_v52 = vadd.f32 %v1662_v9, %v1661_v40  ;;  %1857 = vmatmul.mubr.bf16.gmra.mrb[96].mxu0 %v922_v29 }
 0x289   :  { %1860 = vmatprep.mubr.bf16.mxu0 %v923_v46 }
 0x28a   :  { %v846_v41 = vadd.f32 %v1663_v52, %v2433_v12  ;;  %v903_v10 = vmax.f32 %v843_v63, 0.0 }
 0x28c   :  { %v904_v11 = vmax.f32 %v846_v41, 0.0  ;;  %v1664_v14 = vpop.f32.mrb[32].mxu1 }
 0x28d   :  { %v1665_v15 = vpop.f32.mrb[33].mxu1 }
 0x28e   :  { %v924_v16 = vpack.c.bf16 %v904_v11, %v903_v10  ;;  %v1666_v6 = vadd.f32 %v1665_v15, %v1664_v14  ;;  %v1667_v17 = vpop.f32.mrb[34].mxu1 }
 0x28f   :  { %v1668_v18 = vpop.f32.mrb[35].mxu1 }
 0x290   :  { %1861 = vmatmul.mubr.bf16.gmra.mrb[100].mxu0 %v924_v16  ;;  %v851_v21 = vadd.f32 %v1666_v6, %v2433_v12  ;;  %v1669_v22 = vadd.f32 %v1668_v18, %v1667_v17 }
 0x292   :  { %v854_v23 = vadd.f32 %v1669_v22, %v2433_v12  ;;  %v905_v13 = vmax.f32 %v851_v21, 0.0 }
 0x294   :  { %v906_v24 = vmax.f32 %v854_v23, 0.0  ;;  %v1670_v8 = vpop.f32.mrb[36].mxu1 }
 0x295   :  { %v1671_v25 = vpop.f32.mrb[37].mxu1 }
 0x296   :  { %v1672_v26 = vadd.f32 %v1671_v25, %v1670_v8  ;;  %v1673_v28 = vpop.f32.mrb[38].mxu1  ;;  %v925_v29 = vpack.c.bf16 %v906_v24, %v905_v13 }
 0x297   :  { %v1674_v20 = vpop.f32.mrb[39].mxu1 }
 0x298   :  { %v859_v31 = vadd.f32 %v1672_v26, %v2433_v12  ;;  %v1675_v32 = vadd.f32 %v1674_v20, %v1673_v28  ;;  %1864 = vmatprep.mubr.bf16.mxu0 %v925_v29 }
 0x29a   :  { %v862_v30 = vadd.f32 %v1675_v32, %v2433_v12  ;;  %v907_v33 = vmax.f32 %v859_v31, 0.0 }
 0x29c   :  { %v908_v35 = vmax.f32 %v862_v30, 0.0  ;;  %v1676_v19 = vpop.f32.mrb[40].mxu1 }
 0x29d   :  { %v1677_v36 = vpop.f32.mrb[41].mxu1 }
 0x29e   :  { %v926_v27 = vpack.c.bf16 %v908_v35, %v907_v33  ;;  %v1678_v40 = vadd.f32 %v1677_v36, %v1676_v19  ;;  %v1679_v46 = vpop.f32.mrb[42].mxu1 }
 0x29f   :  { %v1680_v9 = vpop.f32.mrb[43].mxu1 }
 0x2a0   :  { %1865 = vmatmul.mubr.bf16.gmra.mrb[104].mxu0 %v926_v27  ;;  %v867_v63 = vadd.f32 %v1678_v40, %v2433_v12  ;;  %v1681_v52 = vadd.f32 %v1680_v9, %v1679_v46 }
 0x2a2   :  { %v870_v41 = vadd.f32 %v1681_v52, %v2433_v12  ;;  %v909_v10 = vmax.f32 %v867_v63, 0.0 }
 0x2a4   :  { %v910_v11 = vmax.f32 %v870_v41, 0.0  ;;  %v1682_v14 = vpop.f32.mrb[44].mxu1 }
 0x2a5   :  { %v1683_v15 = vpop.f32.mrb[45].mxu1 }
 0x2a6   :  { %v1684_v16 = vadd.f32 %v1683_v15, %v1682_v14  ;;  %v1685_v6 = vpop.f32.mrb[46].mxu1  ;;  %v927_v17 = vpack.c.bf16 %v910_v11, %v909_v10 }
 0x2a7   :  { %v1686_v18 = vpop.f32.mrb[47].mxu1 }
 0x2a8   :  { %v875_v21 = vadd.f32 %v1684_v16, %v2433_v12  ;;  %v1687_v22 = vadd.f32 %v1686_v18, %v1685_v6  ;;  %1868 = vmatprep.mubr.bf16.mxu0 %v927_v17 }
 0x2aa   :  { %v878_v23 = vadd.f32 %v1687_v22, %v2433_v12  ;;  %v911_v13 = vmax.f32 %v875_v21, 0.0 }
 0x2ac   :  { %v912_v24 = vmax.f32 %v878_v23, 0.0 }
 0x2ae   :  { %v928_v8 = vpack.c.bf16 %v912_v24, %v911_v13 }
 0x2b0   :  { %1869 = vmatmul.mubr.bf16.gmra.mrb[108].mxu0 %v928_v8 }
 0x333   :  { %v1842_v25 = vpop.f32.mrb[80].mxu0 }
 0x334   :  { %v1027_v26 = vpop.f32.mrb[81].mxu0 }
 0x335   :  { %v1843_v28 = vpop.f32.mrb[82].mxu0 }
 0x336   :  { %v1155_v29 = vpack.c.bf16 %v1843_v28, %v1842_v25  ;;  %v1030_v20 = vpop.f32.mrb[83].mxu0 }
 0x337   :  { %v1154_v31 = vpack.c.bf16 %v1030_v20, %v1027_v26 }
 0x343   :  { %v1846_v32 = vpop.f32.mrb[84].mxu0 }
 0x344   :  { %v1043_v30 = vpop.f32.mrb[85].mxu0 }
 0x345   :  { %v1847_v33 = vpop.f32.mrb[86].mxu0 }
 0x346   :  { %v1157_v35 = vpack.c.bf16 %v1847_v33, %v1846_v32  ;;  %v1046_v19 = vpop.f32.mrb[87].mxu0 }
 0x347   :  { %v1156_v36 = vpack.c.bf16 %v1046_v19, %v1043_v30 }
 0x34b   :  { %v1850_v27 = vpop.f32.mrb[88].mxu0 }
 0x34c   :  { %v1059_v40 = vpop.f32.mrb[89].mxu0 }
 0x34d   :  { %v1851_v46 = vpop.f32.mrb[90].mxu0 }
 0x34e   :  { %v1159_v12 = vpack.c.bf16 %v1851_v46, %v1850_v27  ;;  %v1062_v9 = vpop.f32.mrb[91].mxu0 }
 0x34f   :  { %v1158_v63 = vpack.c.bf16 %v1062_v9, %v1059_v40 }
 0x353   :  { %v1854_v52 = vpop.f32.mrb[92].mxu0 }
 0x354   :  { %v1075_v41 = vpop.f32.mrb[93].mxu0 }
 0x355   :  { %v1855_v10 = vpop.f32.mrb[94].mxu0 }
 0x356   :  { %v1161_v11 = vpack.c.bf16 %v1855_v10, %v1854_v52  ;;  %v1078_v14 = vpop.f32.mrb[95].mxu0 }
 0x357   :  { %v1160_v15 = vpack.c.bf16 %v1078_v14, %v1075_v41 }
 0x35b   :  { %v1858_v16 = vpop.f32.mrb[96].mxu0 }
 0x35c   :  { %v1091_v6 = vpop.f32.mrb[97].mxu0 }
 0x35d   :  { %v1859_v17 = vpop.f32.mrb[98].mxu0 }
 0x35e   :  { %v1163_v18 = vpack.c.bf16 %v1859_v17, %v1858_v16  ;;  %v1094_v21 = vpop.f32.mrb[99].mxu0 }
 0x35f   :  { %v1162_v22 = vpack.c.bf16 %v1094_v21, %v1091_v6 }
 0x361   :  { %1712 = vmatprep.subr.bf16.mxu1 %v1162_v22 }
 0x362   :  { %1713 = vmatpush3.bf16.msra.mxu1 %v1154_v31 }
 0x363   :  { %v1862_v23 = vpop.f32.mrb[100].mxu0  ;;  %1714 = vmatprep.subr.bf16.mxu1 %v1163_v18 }
 0x364   :  { %v1107_v13 = vpop.f32.mrb[101].mxu0 }
 0x365   :  { %v1863_v24 = vpop.f32.mrb[102].mxu0 }
 0x366   :  { %v1165_v8 = vpack.c.bf16 %v1863_v24, %v1862_v23  ;;  %v1110_v25 = vpop.f32.mrb[103].mxu0  ;;  %1715 = vmatpush3.bf16.msra.mxu1 %v1155_v29 }
 0x367   :  { %v1164_v26 = vpack.c.bf16 %v1110_v25, %v1107_v13 }
 0x369   :  { %1716 = vmatprep.subr.bf16.mxu1 %v1164_v26 }
 0x36a   :  { %1717 = vmatpush3.bf16.msra.mxu1 %v1156_v36 }
 0x36b   :  { %1718 = vmatprep.subr.bf16.mxu1 %v1165_v8 }
 0x36e   :  { %1719 = vmatpush3.bf16.msra.mxu1 %v1157_v35  ;;  %v2008_v35 = vld [vmem:[%s2638_s1 + $0x44] ss:$8 sps:$4 sm:$0xff]  }
 0x373   :  { %v1866_v28 = vpop.f32.mrb[104].mxu0 }
 0x374   :  { %v1123_v20 = vpop.f32.mrb[105].mxu0 }
 0x375   :  { %v1867_v32 = vpop.f32.mrb[106].mxu0 }
 0x376   :  { %v1167_v30 = vpack.c.bf16 %v1867_v32, %v1866_v28  ;;  %v1126_v33 = vpop.f32.mrb[107].mxu0 }
 0x377   :  { %v1166_v19 = vpack.c.bf16 %v1126_v33, %v1123_v20 }
 0x379   :  { %1720 = vmatprep.subr.bf16.mxu1 %v1166_v19 }
 0x37a   :  { %1721 = vmatpush3.bf16.msra.mxu1 %v1158_v63 }
 0x37b   :  { %1722 = vmatprep.subr.bf16.mxu1 %v1167_v30 }
 0x37e   :  { %1723 = vmatpush3.bf16.msra.mxu1 %v1159_v12 }
 0x383   :  { %v1870_v31 = vpop.f32.mrb[108].mxu0 }
 0x384   :  { %v1139_v27 = vpop.f32.mrb[109].mxu0 }
 0x385   :  { %v1871_v40 = vpop.f32.mrb[110].mxu0 }
 0x386   :  { %v1169_v46 = vpack.c.bf16 %v1871_v40, %v1870_v31  ;;  %v1142_v29 = vpop.f32.mrb[111].mxu0 }
 0x387   :  { %v1168_v9 = vpack.c.bf16 %v1142_v29, %v1139_v27 }
 0x389   :  { %1724 = vmatprep.subr.bf16.mxu1 %v1168_v9 }
 0x38a   :  { %1725 = vmatpush3.bf16.msra.mxu1 %v1160_v15 }
 0x38b   :  { %1726 = vmatprep.subr.bf16.mxu1 %v1169_v46 }
 0x38e   :  { %1727 = vmatpush3.bf16.msra.mxu1 %v1161_v11 }
 0x391   :  { %1210 = vmatmul.mubr.bf16.vlgmr.msra.gmra.mrb[48].mxu1 %v2229_v37 }
 0x392   :  { %1217 = vmatprep.mubr.bf16.mxu1 %v2241_v38 }
 0x399   :  { %1218 = vmatmul.mubr.bf16.gmra.mrb[52].mxu1 %v2261_v42 }
 0x39a   :  { %1225 = vmatprep.mubr.bf16.mxu1 %v2271_v44 }
 0x3a1   :  { %1226 = vmatmul.mubr.bf16.gmra.mrb[56].mxu1 %v2288_v47 }
 0x3a2   :  { %1233 = vmatprep.mubr.bf16.mxu1 %v2298_v49 }
 0x3a9   :  { %1234 = vmatmul.mubr.bf16.gmra.mrb[60].mxu1 %v2312_v51 }
 0x3aa   :  { %1241 = vmatprep.mubr.bf16.mxu1 %v2008_v35 }
 0x3b1   :  { %1242 = vmatmul.mubr.bf16.gmra.mrb[64].mxu1 %v2234_v34  ;;  %v2506_v34 = vld [vmem:[%s2641_s5] ss:$0 sm:$0xff] }
 0x3b2   :  { %1249 = vmatprep.mubr.bf16.mxu1 %v2246_v39 }
 0x3b9   :  { %1250 = vmatmul.mubr.bf16.gmra.mrb[68].mxu1 %v2266_v43 }
 0x3ba   :  { %1257 = vmatprep.mubr.bf16.mxu1 %v2276_v45 }
 0x3c1   :  { %1258 = vmatmul.mubr.bf16.gmra.mrb[72].mxu1 %v2293_v48 }
 0x3c2   :  { %1265 = vmatprep.mubr.bf16.mxu1 %v2303_v50 }
 0x3c9   :  { %1266 = vmatmul.mubr.bf16.gmra.mrb[76].mxu1 %v2317_v53 }
 0x3ca   :  { %1273 = vmatprep.mubr.bf16.mxu1 %v2322_v54 }
 0x3d1   :  { %1274 = vmatmul.mubr.bf16.gmra.mrb[80].mxu1 %v2330_v55 }
 0x3d2   :  { %1281 = vmatprep.mubr.bf16.mxu1 %v2335_v57 }
 0x3d9   :  { %1282 = vmatmul.mubr.bf16.gmra.mrb[84].mxu1 %v2342_v58 }
 0x3da   :  { %1289 = vmatprep.mubr.bf16.mxu1 %v2347_v59 }
 0x3e1   :  { %1290 = vmatmul.mubr.bf16.gmra.mrb[88].mxu1 %v2354_v60 }
 0x3e2   :  { %1297 = vmatprep.mubr.bf16.mxu1 %v2359_v61 }
 0x3e9   :  { %1298 = vmatmul.mubr.bf16.gmra.mrb[92].mxu1 %v2366_v62 }
 0x3ea   :  { %1305 = vmatprep.mubr.bf16.mxu1 %v2371_v0 }
 0x3f1   :  { %1306 = vmatmul.mubr.bf16.gmra.mrb[96].mxu1 %v2378_v1 }
 0x3f2   :  { %1313 = vmatprep.mubr.bf16.mxu1 %v2383_v2 }
 0x3f9   :  { %1314 = vmatmul.mubr.bf16.gmra.mrb[100].mxu1 %v2390_v56 }
 0x3fa   :  { %1321 = vmatprep.mubr.bf16.mxu1 %v2395_v3 }
 0x401   :  { %1322 = vmatmul.mubr.bf16.gmra.mrb[104].mxu1 %v2402_v4 }
 0x402   :  { %1329 = vmatprep.mubr.bf16.mxu1 %v2407_v5 }
 0x409   :  { %1330 = vmatmul.mubr.bf16.gmra.mrb[108].mxu1 %v2414_v7 }
 0x464   :  { %v1728_v37 = vpop.f32.mrb[48].mxu1 }
 0x465   :  { %v1729_v38 = vpop.f32.mrb[49].mxu1 }
 0x466   :  { %v1730_v39 = vadd.f32 %v1729_v38, %v1728_v37  ;;  %v1731_v42 = vpop.f32.mrb[50].mxu1 }
 0x467   :  { %v1732_v43 = vpop.f32.mrb[51].mxu1 }
 0x468   :  { %v1212_v44 = vadd.f32 %v1730_v39, %v2506_v34  ;;  %v1733_v45 = vadd.f32 %v1732_v43, %v1731_v42 }
 0x46a   :  { %1338 = vst [vmem:[%s2642_s6] sm:$0xff] %v1212_v44  ;;  %v1215_v47 = vadd.f32 %v1733_v45, %v2506_v34 }
 0x46c   :  { %1339 = vst [vmem:[%s2642_s6 + $0x8] sm:$0xff] %v1215_v47  ;;  %v1734_v48 = vpop.f32.mrb[52].mxu1 }
 0x46d   :  { %v1735_v49 = vpop.f32.mrb[53].mxu1 }
 0x46e   :  { %v1736_v50 = vadd.f32 %v1735_v49, %v1734_v48  ;;  %v1737_v51 = vpop.f32.mrb[54].mxu1 }
 0x46f   :  { %v1738_v53 = vpop.f32.mrb[55].mxu1 }
 0x470   :  { %v1220_v54 = vadd.f32 %v1736_v50, %v2506_v34  ;;  %v1739_v55 = vadd.f32 %v1738_v53, %v1737_v51 }
 0x472   :  { %1340 = vst [vmem:[%s2642_s6 + $0x10] sm:$0xff] %v1220_v54  ;;  %v1223_v57 = vadd.f32 %v1739_v55, %v2506_v34 }
 0x474   :  { %1341 = vst [vmem:[%s2642_s6 + $0x18] sm:$0xff] %v1223_v57  ;;  %v1740_v58 = vpop.f32.mrb[56].mxu1 }
 0x475   :  { %v1741_v59 = vpop.f32.mrb[57].mxu1 }
 0x476   :  { %v1742_v60 = vadd.f32 %v1741_v59, %v1740_v58  ;;  %v1743_v61 = vpop.f32.mrb[58].mxu1 }
 0x477   :  { %v1744_v62 = vpop.f32.mrb[59].mxu1 }
 0x478   :  { %v1228_v0 = vadd.f32 %v1742_v60, %v2506_v34  ;;  %v1745_v1 = vadd.f32 %v1744_v62, %v1743_v61 }
 0x47a   :  { %1342 = vst [vmem:[%s2642_s6 + $0x20] sm:$0xff] %v1228_v0  ;;  %v1231_v2 = vadd.f32 %v1745_v1, %v2506_v34 }
 0x47c   :  { %1343 = vst [vmem:[%s2642_s6 + $0x28] sm:$0xff] %v1231_v2  ;;  %v1746_v56 = vpop.f32.mrb[60].mxu1 }
 0x47d   :  { %v1747_v3 = vpop.f32.mrb[61].mxu1 }
 0x47e   :  { %v1748_v4 = vadd.f32 %v1747_v3, %v1746_v56  ;;  %v1749_v5 = vpop.f32.mrb[62].mxu1 }
 0x47f   :  { %v1750_v7 = vpop.f32.mrb[63].mxu1 }
 0x480   :  { %v1236_v36 = vadd.f32 %v1748_v4, %v2506_v34  ;;  %v1751_v12 = vadd.f32 %v1750_v7, %v1749_v5 }
 0x482   :  { %1344 = vst [vmem:[%s2642_s6 + $0x30] sm:$0xff] %v1236_v36  ;;  %v1239_v63 = vadd.f32 %v1751_v12, %v2506_v34 }
 0x484   :  { %1345 = vst [vmem:[%s2642_s6 + $0x38] sm:$0xff] %v1239_v63  ;;  %v1752_v52 = vpop.f32.mrb[64].mxu1 }
 0x485   :  { %v1753_v41 = vpop.f32.mrb[65].mxu1 }
 0x486   :  { %v1754_v10 = vadd.f32 %v1753_v41, %v1752_v52  ;;  %v1755_v11 = vpop.f32.mrb[66].mxu1 }
 0x487   :  { %v1756_v14 = vpop.f32.mrb[67].mxu1 }
 0x488   :  { %v1244_v15 = vadd.f32 %v1754_v10, %v2506_v34  ;;  %v1757_v16 = vadd.f32 %v1756_v14, %v1755_v11 }
 0x48a   :  { %1346 = vst [vmem:[%s2642_s6 + $0x40] sm:$0xff] %v1244_v15  ;;  %v1247_v6 = vadd.f32 %v1757_v16, %v2506_v34 }
 0x48c   :  { %1347 = vst [vmem:[%s2642_s6 + $0x48] sm:$0xff] %v1247_v6  ;;  %v1758_v17 = vpop.f32.mrb[68].mxu1 }
 0x48d   :  { %v1759_v18 = vpop.f32.mrb[69].mxu1 }
 0x48e   :  { %v1760_v21 = vadd.f32 %v1759_v18, %v1758_v17  ;;  %v1761_v22 = vpop.f32.mrb[70].mxu1 }
 0x48f   :  { %v1762_v23 = vpop.f32.mrb[71].mxu1 }
 0x490   :  { %v1252_v13 = vadd.f32 %v1760_v21, %v2506_v34  ;;  %v1763_v24 = vadd.f32 %v1762_v23, %v1761_v22 }
 0x492   :  { %1348 = vst [vmem:[%s2642_s6 + $0x50] sm:$0xff] %v1252_v13  ;;  %v1255_v8 = vadd.f32 %v1763_v24, %v2506_v34 }
 0x494   :  { %1349 = vst [vmem:[%s2642_s6 + $0x58] sm:$0xff] %v1255_v8  ;;  %v1764_v25 = vpop.f32.mrb[72].mxu1 }
 0x495   :  { %v1765_v26 = vpop.f32.mrb[73].mxu1 }
 0x496   :  { %v1766_v28 = vadd.f32 %v1765_v26, %v1764_v25  ;;  %v1767_v20 = vpop.f32.mrb[74].mxu1 }
 0x497   :  { %v1768_v32 = vpop.f32.mrb[75].mxu1 }
 0x498   :  { %v1260_v30 = vadd.f32 %v1766_v28, %v2506_v34  ;;  %v1769_v33 = vadd.f32 %v1768_v32, %v1767_v20 }
 0x49a   :  { %1350 = vst [vmem:[%s2642_s6 + $0x60] sm:$0xff] %v1260_v30  ;;  %v1263_v19 = vadd.f32 %v1769_v33, %v2506_v34 }
 0x49c   :  { %1351 = vst [vmem:[%s2642_s6 + $0x68] sm:$0xff] %v1263_v19  ;;  %v1770_v31 = vpop.f32.mrb[76].mxu1 }
 0x49d   :  { %v1771_v27 = vpop.f32.mrb[77].mxu1 }
 0x49e   :  { %v1772_v40 = vadd.f32 %v1771_v27, %v1770_v31  ;;  %v1773_v46 = vpop.f32.mrb[78].mxu1 }
 0x49f   :  { %v1774_v29 = vpop.f32.mrb[79].mxu1 }
 0x4a0   :  { %v1268_v9 = vadd.f32 %v1772_v40, %v2506_v34  ;;  %v1775_v35 = vadd.f32 %v1774_v29, %v1773_v46 }
 0x4a2   :  { %1352 = vst [vmem:[%s2642_s6 + $0x70] sm:$0xff] %v1268_v9  ;;  %v1271_v37 = vadd.f32 %v1775_v35, %v2506_v34 }
 0x4a4   :  { %1353 = vst [vmem:[%s2642_s6 + $0x78] sm:$0xff] %v1271_v37  ;;  %v1776_v38 = vpop.f32.mrb[80].mxu1 }
 0x4a5   :  { %v1777_v39 = vpop.f32.mrb[81].mxu1 }
 0x4a6   :  { %v1778_v42 = vadd.f32 %v1777_v39, %v1776_v38  ;;  %v1779_v43 = vpop.f32.mrb[82].mxu1 }
 0x4a7   :  { %v1780_v44 = vpop.f32.mrb[83].mxu1 }
 0x4a8   :  { %v1276_v45 = vadd.f32 %v1778_v42, %v2506_v34  ;;  %v1781_v47 = vadd.f32 %v1780_v44, %v1779_v43 }
 0x4aa   :  { %1354 = vst [vmem:[%s2642_s6 + $0x80] sm:$0xff] %v1276_v45  ;;  %v1279_v48 = vadd.f32 %v1781_v47, %v2506_v34 }
 0x4ac   :  { %1355 = vst [vmem:[%s2642_s6 + $0x88] sm:$0xff] %v1279_v48  ;;  %v1782_v49 = vpop.f32.mrb[84].mxu1 }
 0x4ad   :  { %v1783_v50 = vpop.f32.mrb[85].mxu1 }
 0x4ae   :  { %v1784_v51 = vadd.f32 %v1783_v50, %v1782_v49  ;;  %v1785_v53 = vpop.f32.mrb[86].mxu1 }
 0x4af   :  { %v1786_v54 = vpop.f32.mrb[87].mxu1 }
 0x4b0   :  { %v1284_v55 = vadd.f32 %v1784_v51, %v2506_v34  ;;  %v1787_v57 = vadd.f32 %v1786_v54, %v1785_v53 }
 0x4b2   :  { %1356 = vst [vmem:[%s2642_s6 + $0x90] sm:$0xff] %v1284_v55  ;;  %v1287_v58 = vadd.f32 %v1787_v57, %v2506_v34 }
 0x4b4   :  { %1357 = vst [vmem:[%s2642_s6 + $0x98] sm:$0xff] %v1287_v58  ;;  %v1788_v59 = vpop.f32.mrb[88].mxu1 }
 0x4b5   :  { %v1789_v60 = vpop.f32.mrb[89].mxu1 }
 0x4b6   :  { %v1790_v61 = vadd.f32 %v1789_v60, %v1788_v59  ;;  %v1791_v62 = vpop.f32.mrb[90].mxu1 }
 0x4b7   :  { %v1792_v0 = vpop.f32.mrb[91].mxu1 }
 0x4b8   :  { %v1292_v1 = vadd.f32 %v1790_v61, %v2506_v34  ;;  %v1793_v2 = vadd.f32 %v1792_v0, %v1791_v62 }
 0x4ba   :  { %1358 = vst [vmem:[%s2642_s6 + $0xa0] sm:$0xff] %v1292_v1  ;;  %v1295_v56 = vadd.f32 %v1793_v2, %v2506_v34 }
 0x4bc   :  { %1359 = vst [vmem:[%s2642_s6 + $0xa8] sm:$0xff] %v1295_v56  ;;  %v1794_v3 = vpop.f32.mrb[92].mxu1 }
 0x4bd   :  { %v1795_v4 = vpop.f32.mrb[93].mxu1 }
 0x4be   :  { %v1796_v5 = vadd.f32 %v1795_v4, %v1794_v3  ;;  %v1797_v7 = vpop.f32.mrb[94].mxu1 }
 0x4bf   :  { %v1798_v36 = vpop.f32.mrb[95].mxu1 }
 0x4c0   :  { %v1300_v12 = vadd.f32 %v1796_v5, %v2506_v34  ;;  %v1799_v63 = vadd.f32 %v1798_v36, %v1797_v7 }
 0x4c2   :  { %1360 = vst [vmem:[%s2642_s6 + $0xb0] sm:$0xff] %v1300_v12  ;;  %v1303_v52 = vadd.f32 %v1799_v63, %v2506_v34 }
 0x4c4   :  { %1361 = vst [vmem:[%s2642_s6 + $0xb8] sm:$0xff] %v1303_v52  ;;  %v1800_v41 = vpop.f32.mrb[96].mxu1 }
 0x4c5   :  { %v1801_v10 = vpop.f32.mrb[97].mxu1 }
 0x4c6   :  { %v1802_v11 = vadd.f32 %v1801_v10, %v1800_v41  ;;  %v1803_v14 = vpop.f32.mrb[98].mxu1 }
 0x4c7   :  { %v1804_v15 = vpop.f32.mrb[99].mxu1 }
 0x4c8   :  { %v1308_v16 = vadd.f32 %v1802_v11, %v2506_v34  ;;  %v1805_v6 = vadd.f32 %v1804_v15, %v1803_v14 }
 0x4ca   :  { %1362 = vst [vmem:[%s2642_s6 + $0xc0] sm:$0xff] %v1308_v16  ;;  %v1311_v17 = vadd.f32 %v1805_v6, %v2506_v34 }
 0x4cc   :  { %1363 = vst [vmem:[%s2642_s6 + $0xc8] sm:$0xff] %v1311_v17  ;;  %v1806_v18 = vpop.f32.mrb[100].mxu1 }
 0x4cd   :  { %v1807_v21 = vpop.f32.mrb[101].mxu1 }
 0x4ce   :  { %v1808_v22 = vadd.f32 %v1807_v21, %v1806_v18  ;;  %v1809_v23 = vpop.f32.mrb[102].mxu1 }
 0x4cf   :  { %v1810_v13 = vpop.f32.mrb[103].mxu1 }
 0x4d0   :  { %v1316_v24 = vadd.f32 %v1808_v22, %v2506_v34  ;;  %v1811_v8 = vadd.f32 %v1810_v13, %v1809_v23 }
 0x4d2   :  { %1364 = vst [vmem:[%s2642_s6 + $0xd0] sm:$0xff] %v1316_v24  ;;  %v1319_v25 = vadd.f32 %v1811_v8, %v2506_v34 }
 0x4d4   :  { %1365 = vst [vmem:[%s2642_s6 + $0xd8] sm:$0xff] %v1319_v25  ;;  %v1812_v26 = vpop.f32.mrb[104].mxu1 }
 0x4d5   :  { %v1813_v28 = vpop.f32.mrb[105].mxu1 }
 0x4d6   :  { %v1814_v20 = vadd.f32 %v1813_v28, %v1812_v26  ;;  %v1815_v32 = vpop.f32.mrb[106].mxu1 }
 0x4d7   :  { %v1816_v30 = vpop.f32.mrb[107].mxu1 }
 0x4d8   :  { %v1324_v33 = vadd.f32 %v1814_v20, %v2506_v34  ;;  %v1817_v19 = vadd.f32 %v1816_v30, %v1815_v32 }
 0x4da   :  { %1366 = vst [vmem:[%s2642_s6 + $0xe0] sm:$0xff] %v1324_v33  ;;  %v1327_v31 = vadd.f32 %v1817_v19, %v2506_v34 }
 0x4dc   :  { %1367 = vst [vmem:[%s2642_s6 + $0xe8] sm:$0xff] %v1327_v31  ;;  %v1818_v27 = vpop.f32.mrb[108].mxu1 }
 0x4dd   :  { %v1819_v40 = vpop.f32.mrb[109].mxu1 }
 0x4de   :  { %v1820_v46 = vadd.f32 %v1819_v40, %v1818_v27  ;;  %v1821_v29 = vpop.f32.mrb[110].mxu1 }
 0x4df   :  { %v1822_v9 = vpop.f32.mrb[111].mxu1 }
 0x4e0   :  { %v1332_v35 = vadd.f32 %v1820_v46, %v2506_v34  ;;  %v1823_v37 = vadd.f32 %v1822_v9, %v1821_v29 }
 0x4e2   :  { %1368 = vst [vmem:[%s2642_s6 + $0xf0] sm:$0xff] %v1332_v35  ;;  %v1335_v38 = vadd.f32 %v1823_v37, %v2506_v34 }
 0x4e4   :  { %1369 = vst [vmem:[%s2642_s6 + $0xf8] sm:$0xff] %v1335_v38 }

</bundles_post_ra>
